<compile_context>
chip_gen: v5e
topology: v5e:2x2
jax: 0.10.0
libtpu: 0.0.40
codegen_flags: <defaults>
</compile_context>

<pallas_src>
import functools

import jax
import jax.numpy as jnp
from jax.experimental import pallas as pl
from jax.experimental.pallas import tpu as pltpu


def _stce_kernel(x_ref, y_ref, loss_ref, *, n_rows):
    """One row tile: loss[i] = lse(x[i,:]) * sum_c y[i,c] - sum_c y[i,c]*x[i,c].

    Invariant: every reduction here is strictly per-row.  The last tile may
    read past the logical end of x/y (Pallas pads the block with unspecified
    data); those garbage rows can produce Inf/NaN but can never leak into
    valid rows, and they are masked to 0 before the store.
    """
    i = pl.program_id(0)
    tm = x_ref.shape[0]

    x = x_ref[...].astype(jnp.float32)   # (tm, C)
    y = y_ref[...].astype(jnp.float32)   # (tm, C)

    # Numerically-stable logsumexp, kept as a (tm, 1) column (natural layout).
    m = jnp.max(x, axis=-1, keepdims=True)                               # (tm, 1)
    lse = m + jnp.log(jnp.sum(jnp.exp(x - m), axis=-1, keepdims=True))   # (tm, 1)

    # sum_c -y*log_softmax(x) == lse*sum_c(y) - sum_c(y*x): avoids broadcasting
    # lse back over (tm, C) and the (lse - x) / y*(lse - x) full-tile temps.
    sum_y = jnp.sum(y, axis=-1, keepdims=True)                           # (tm, 1)
    sum_xy = jnp.sum(y * x, axis=-1, keepdims=True)                      # (tm, 1)
    per_row = lse * sum_y - sum_xy                                       # (tm, 1)

    # Single sublane->lane relayout so the store is lane-dense (one (1, tm) row).
    loss = per_row.reshape(1, tm)                                        # (1, tm)

    # Tail masking (only emitted when the row count isn't a tile multiple).
    if n_rows % tm != 0:
        col = jax.lax.broadcasted_iota(jnp.int32, (1, tm), 1)
        loss = jnp.where(i * tm + col < n_rows, loss, 0.0)

    loss_ref[...] = loss


def _vmem_budgets():
    """(tile budget for _pick_tm, scoped-VMEM-limit ceiling), generation aware."""
    try:
        cap = int(pltpu.get_tpu_info().vmem_capacity_bytes)
    except Exception:
        cap = 64 * 2**20  # conservative fallback (v7x per-TensorCore VMEM)
    if cap >= 96 * 2**20:
        # v5e / v6e: 128 MiB physical VMEM -> big streaming tiles are free.
        return 64 * 2**20, 100 * 2**20
    # v7x-like: 64 MiB physical; keep headroom for Mosaic internal scratch.
    return 28 * 2**20, 48 * 2**20


def _pick_tm(n_rows, c, x_itemsize, y_itemsize, budget_bytes, cap_rows):
    """Largest row tile whose working set fits `budget_bytes` of VMEM.

    Per tile row: double-buffered streaming inputs in their source dtype
    (2 bufs x 2 inputs) plus ~3 f32 full-width intermediates in the body.
    """
    bytes_per_row = 2 * c * (x_itemsize + y_itemsize) + 3 * c * 4
    tm = max(8, budget_bytes // bytes_per_row)
    tm = min(tm, cap_rows)

    # Sublane-packing alignment: f32 -> 8 rows, bf16 -> 16, int8 -> 32.
    packing = max(1, 4 // max(1, min(x_itemsize, y_itemsize)))
    sub_align = 8 * packing
    # Never use a tile (much) larger than the actual row count.
    n_aligned = pl.cdiv(n_rows, sub_align) * sub_align
    tm = min(tm, n_aligned)

    # Big tiles: round to 128 so the lane-dense output block is a full-lane
    # multiple and the input sublane dim stays packing-aligned.
    align = 128 if tm >= 128 else sub_align
    tm = max(align, (tm // align) * align)
    return int(tm)


@functools.partial(jax.jit, static_argnames=("reduction", "tm_cap"))
def soft_target_cross_entropy(x, y, reduction="mean", tm_cap=None):
    """Pallas implementation of SoftTargetCrossEntropy.forward(x, y)."""
    if reduction not in ("mean", "none"):
        raise NotImplementedError

    orig_shape = x.shape
    c = orig_shape[-1]
    x2 = x.reshape(-1, c)
    y2 = y.reshape(-1, c)
    n = x2.shape[0]

    x_item = jnp.dtype(x2.dtype).itemsize
    y_item = jnp.dtype(y2.dtype).itemsize

    budget, limit_cap = _vmem_budgets()
    tm = _pick_tm(n, c, x_item, y_item, budget, tm_cap if tm_cap else 8192)
    num_tiles = pl.cdiv(n, tm)

    # Scoped-VMEM limit: double-buffered inputs + f32 intermediates + output,
    # clamped to a generation-aware ceiling (<= ~48 MiB on v7x, <= ~100 MiB on
    # v5e/v6e) so Mosaic keeps headroom for its own scratch/semaphores.
    in_block_bytes = tm * c * (x_item + y_item)        # one buffer of each input
    tmp_bytes = 3 * tm * c * 4                         # f32 intermediates
    want = 2 * in_block_bytes + tmp_bytes + 2 * tm * 4 + 2 * 2**20
    vmem_limit = int(min(limit_cap, max(32 * 2**20, want)))

    losses = pl.pallas_call(
        functools.partial(_stce_kernel, n_rows=n),
        out_shape=jax.ShapeDtypeStruct((num_tiles, tm), jnp.float32),
        grid_spec=pltpu.PrefetchScalarGridSpec(
            num_scalar_prefetch=0,
            grid=(num_tiles,),
            in_specs=[
                pl.BlockSpec((tm, c), lambda i: (i, 0)),
                pl.BlockSpec((tm, c), lambda i: (i, 0)),
            ],
            out_specs=pl.BlockSpec((1, tm), lambda i: (i, 0)),
        ),
        compiler_params=pltpu.CompilerParams(
            # Pure streaming kernel, no cross-tile state -> shard the row-tile
            # grid across TensorCores on v7x.  (Check in xprof that both TCs
            # are active; switch to pltpu.CORE_PARALLEL if codegen doesn't shard.)
            dimension_semantics=("parallel",),
            vmem_limit_bytes=vmem_limit,
        ),
        # Advisory: pure HBM-bandwidth kernel; helps XLA overlap neighbors.
        cost_estimate=pl.CostEstimate(
            flops=5 * n * c,
            transcendentals=n * c,
            bytes_accessed=n * c * (x_item + y_item) + 4 * n,
        ),
    )(x2, y2)

    if reduction == "mean":
        # Masked tail rows contribute 0; divide by the true row count.
        # Accumulated and returned in float32 (accumulation precision).
        return jnp.sum(losses) / jnp.float32(n)
    else:  # "none"
        per_row = losses.reshape(-1)[:n].reshape(orig_shape[:-1])
        # Deliberate: match PyTorch's dtype behaviour (loss returned in x.dtype).
        return per_row.astype(x.dtype)


def _reference(x, y, reduction="mean"):
    loss = jnp.sum(-y * jax.nn.log_softmax(x, axis=-1), axis=-1)
    return loss.mean() if reduction == "mean" else loss


if __name__ == "__main__":
    key = jax.random.PRNGKey(0)
    kx, ky = jax.random.split(key)

    # Small shapes: (batch=2, seq=8, classes=128); y is a per-row soft distribution.
    b, s, c = 2, 8, 128
    x = jax.random.normal(kx, (b, s, c), dtype=jnp.float32)
    y = jax.nn.softmax(jax.random.normal(ky, (b, s, c), dtype=jnp.float32), axis=-1)

    out_mean = soft_target_cross_entropy(x, y, reduction="mean")
    out_none = soft_target_cross_entropy(x, y, reduction="none")

    # Ragged row count (13 rows) exercises the in-kernel tail masking path.
    xr = jax.random.normal(kx, (13, c), dtype=jnp.float32)
    yr = jax.nn.softmax(jax.random.normal(ky, (13, c), dtype=jnp.float32), axis=-1)
    out_mean_r = soft_target_cross_entropy(xr, yr, reduction="mean")

    # Multi-tile grid (tm capped at 128 rows): exercises the lane-dense per-tile
    # output blocks and tail masking across several grid steps.
    xg = jax.random.normal(kx, (3, 100, c), dtype=jnp.float32)
    yg = jax.nn.softmax(jax.random.normal(ky, (3, 100, c), dtype=jnp.float32), axis=-1)
    out_none_g = soft_target_cross_entropy(xg, yg, reduction="none", tm_cap=128)
    out_mean_g = soft_target_cross_entropy(xg, yg, reduction="mean", tm_cap=128)

    jax.block_until_ready((out_mean, out_none, out_mean_r, out_none_g, out_mean_g))

    ref_mean = _reference(x, y, "mean")
    ref_none = _reference(x, y, "none")
    ref_mean_r = _reference(xr, yr, "mean")
    ref_none_g = _reference(xg, yg, "none")
    ref_mean_g = _reference(xg, yg, "mean")

    assert jnp.allclose(out_mean, ref_mean, atol=1e-5, rtol=1e-5), (out_mean, ref_mean)
    assert jnp.allclose(out_none, ref_none, atol=1e-5, rtol=1e-5)
    assert jnp.allclose(out_mean_r, ref_mean_r, atol=1e-5, rtol=1e-5), (out_mean_r, ref_mean_r)
    assert jnp.allclose(out_none_g, ref_none_g, atol=1e-5, rtol=1e-5)
    assert jnp.allclose(out_mean_g, ref_mean_g, atol=1e-5, rtol=1e-5), (out_mean_g, ref_mean_g)

    print("KERNEL_OK")
</pallas_src>

<mosaic_0001>
module attributes {stable_mosaic.version = 11 : i64} {
  func.func @_stce_kernel(%arg0: i32, %arg1: memref<16x128xf32, #tpu.memory_space<vmem>>, %arg2: memref<16x128xf32, #tpu.memory_space<vmem>>, %arg3: memref<1x16xf32, #tpu.memory_space<vmem>>) attributes {dimension_semantics = [#tpu.dimension_semantics<parallel>], iteration_bounds = array<i64: 1>, scalar_prefetch = 0 : i64, scratch_operands = 0 : i64, tpu.core_type = #tpu.core_type<tc>, window_params = [{transform_indices = @transform_0, window_bounds = array<i64: 16, 128>}, {transform_indices = @transform_1, window_bounds = array<i64: 16, 128>}, {transform_indices = @transform_2, window_bounds = array<i64: 1, 16>}]} {
    %c0 = arith.constant 0 : index
    %c0_0 = arith.constant 0 : index
    %0 = vector.load %arg1[%c0, %c0_0] : memref<16x128xf32, #tpu.memory_space<vmem>>, vector<16x128xf32>
    %c0_1 = arith.constant 0 : index
    %c0_2 = arith.constant 0 : index
    %1 = vector.load %arg2[%c0_1, %c0_2] : memref<16x128xf32, #tpu.memory_space<vmem>>, vector<16x128xf32>
    %cst = arith.constant dense<0xFF800000> : vector<16xf32>
    %2 = vector.multi_reduction <maximumf>, %0, %cst [1] : vector<16x128xf32> to vector<16xf32>
    %3 = vector.shape_cast %2 : vector<16xf32> to vector<16x1xf32>
    %4 = vector.broadcast %3 : vector<16x1xf32> to vector<16x128xf32>
    %5 = arith.subf %0, %4 : vector<16x128xf32>
    %6 = math.exp %5 : vector<16x128xf32>
    %cst_3 = arith.constant dense<0.000000e+00> : vector<16xf32>
    %7 = vector.multi_reduction <add>, %6, %cst_3 [1] : vector<16x128xf32> to vector<16xf32>
    %8 = vector.shape_cast %7 : vector<16xf32> to vector<16x1xf32>
    %9 = math.log %8 : vector<16x1xf32>
    %10 = arith.addf %3, %9 : vector<16x1xf32>
    %cst_4 = arith.constant dense<0.000000e+00> : vector<16xf32>
    %11 = vector.multi_reduction <add>, %1, %cst_4 [1] : vector<16x128xf32> to vector<16xf32>
    %12 = vector.shape_cast %11 : vector<16xf32> to vector<16x1xf32>
    %13 = arith.mulf %1, %0 : vector<16x128xf32>
    %cst_5 = arith.constant dense<0.000000e+00> : vector<16xf32>
    %14 = vector.multi_reduction <add>, %13, %cst_5 [1] : vector<16x128xf32> to vector<16xf32>
    %15 = vector.shape_cast %14 : vector<16xf32> to vector<16x1xf32>
    %16 = arith.mulf %10, %12 : vector<16x1xf32>
    %17 = arith.subf %16, %15 : vector<16x1xf32>
    %18 = vector.shape_cast %17 : vector<16x1xf32> to vector<1x16xf32>
    %c0_6 = arith.constant 0 : index
    %c0_7 = arith.constant 0 : index
    %19 = vector.load %arg3[%c0_6, %c0_7] : memref<1x16xf32, #tpu.memory_space<vmem>>, vector<1x16xf32>
    tpu.vector_store %arg3[%c0_6, %c0_7], %18 {strides = array<i32>} : memref<1x16xf32, #tpu.memory_space<vmem>>, vector<1x16xf32>,
    return
  }
  func.func @transform_0(%arg0: i32) -> (i32, i32) {
    %c0_i32 = arith.constant 0 : i32
    %c0_i32_0 = arith.constant 0 : i32
    return %arg0, %c0_i32 : i32, i32
  }
  func.func @transform_1(%arg0: i32) -> (i32, i32) {
    %c0_i32 = arith.constant 0 : i32
    %c0_i32_0 = arith.constant 0 : i32
    return %arg0, %c0_i32 : i32, i32
  }
  func.func @transform_2(%arg0: i32) -> (i32, i32) {
    %c0_i32 = arith.constant 0 : i32
    %c0_i32_0 = arith.constant 0 : i32
    return %arg0, %c0_i32 : i32, i32
  }
}

</mosaic_0001>

<bundles_post_ra>
// kernel: soft_target_cross_entropy.1
= control target key start
LH: loop header
LB: loop body
LE: loop exit
PB: predicated region body
PF: predicated region fallthrough
CT: control target
= control target key end

     0   :  { %7 = vsyncpa [#allocation3], 0  ;;  %s191_s0 = inlined_call_operand.hbm [shape: f32[16,128], index: 0, kind: input, shape index: {}]   ;;  %s192_s1 = inlined_call_operand.hbm [shape: f32[16,128], index: 1, kind: input, shape index: {}]   ;;  %s193_s2 = inlined_call_operand.vmem [shape: f32[1,16], index: 2, kind: output, shape index: {}]  }
   0x1   :  { %s13_s11 = sshll.u32 %s191_s0, 4  ;;  %s14_s11 = int_to_ptr.hbm [resolvable:$true] %s13_s11 }
   0x2   :  { %8 = vsyncpa [#allocation5], 0  ;;  %s163_s12 = smov [#allocation2]   ;;  %s26_s16 = sshll.u32 %s192_s1, 4  ;;  %s27_s16 = int_to_ptr.hbm [resolvable:$true] %s26_s16 }
   0x3   :  { %s15_s13 = sshll.u32 %s163_s12, 4  ;;  %s164_s17 = smov 128   ;;  %s16_s13 = int_to_ptr.vmem [resolvable:$true] %s15_s13 }
   0x4   :  { %s165_s18 = smov 8   ;;  %s166_s19 = smov [#allocation4]  }
   0x5   :  { %21 = dma.hbm_to_vmem [thread:$0]  %s14_s11, 256, %s16_s13, [#allocation3], %s164_s17, %s164_s17, %s165_s18  }
   0x6   :  { %s28_s20 = sshll.u32 %s166_s19, 4  ;;  %s29_s20 = int_to_ptr.vmem [resolvable:$true] %s28_s20 }
   0x7   :  { %34 = dma.hbm_to_vmem [thread:$0]  %s27_s16, 256, %s29_s20, [#allocation5], %s164_s17, %s164_s17, %s165_s18  }
   0x8   :  { %159 = dma.done.wait [#allocation3], 256  }
   0x9   :  { %160 = vsyncadd [#allocation3], 4294967040 }
   0xa   :  { %161 = dma.done.wait [#allocation5], 256  }
   0xb   :  { %162 = vsyncadd [#allocation5], 4294967040  ;;  %v43_v0 = vld [vmem:[#allocation2] sm:$0xff]  ;;  %v44_v1 = vld [vmem:[#allocation2 + $0x8] sm:$0xff]  ;;  %v83_v20 = vlaneseq  ;;  %vm88_vm0 = vcmask 130112   ;;  %vm91_vm1 = vcmask 122880  }
   0xc   :  { %47 = vmax.xlane.f32.xlu0 %v43_v0  ;;  %v45_v2 = vld [vmem:[#allocation4] sm:$0xff]  ;;  %v46_v4 = vld [vmem:[#allocation4 + $0x8] sm:$0xff] }
   0xd   :  { %67 = vadd.xlane.f32.xlu2 %v45_v2  ;;  %v71_v3 = vmul.f32 %v45_v2, %v43_v0  ;;  %v72_v13 = vmul.f32 %v46_v4, %v44_v1  ;;  %v84_v26 = vand.u32 127, %v83_v20 }
   0xf   :  { %v86_v31 = vadd.s32 4294967288, %v84_v26 }
  0x14   :  { %49 = vmax.xlane.f32.xlu0 %v44_v1 }
  0x15   :  { %69 = vadd.xlane.f32.xlu2 %v46_v4 }
  0x1c   :  { %73 = vadd.xlane.f32.xlu0 %v71_v3 }
  0x7f   :  { %v48_v5 = vpop.xlane.xlu0 %47 }
  0x80   :  { %v51_v6 = vsub.f32 %v43_v0, %v48_v5  ;;  %v68_v16 = vpop.xlane.xlu2 %67 }
  0x82   :  { %v53_v7 = vmul.f32 1.442695, %v51_v6 }
  0x84   :  { %103 = vpow2.f32 %v53_v7 }
  0x87   :  { %v50_v8 = vpop.xlane.xlu0 %49 }
  0x88   :  { %v52_v9 = vsub.f32 %v44_v1, %v50_v8  ;;  %v70_v25 = vpop.xlane.xlu2 %69 }
  0x8a   :  { %v104_v10 = vpop.eup %103  ;;  %v55_v11 = vmul.f32 1.442695, %v52_v9 }
  0x8b   :  { %57 = vadd.xlane.f32.xlu1 %v104_v10 }
  0x8c   :  { %105 = vpow2.f32 %v55_v11 }
  0x8f   :  { %v74_v24 = vpop.xlane.xlu0 %73 }
  0x92   :  { %v106_v12 = vpop.eup %105 }
  0x93   :  { %59 = vadd.xlane.f32.xlu1 %v106_v12 }
  0x9b   :  { %75 = vadd.xlane.f32.xlu1 %v72_v13 }
  0xfe   :  { %v58_v14 = vpop.xlane.xlu1 %57 }
  0xff   :  { %107 = vlog2.f32 %v58_v14 }
 0x105   :  { %v108_v15 = vpop.eup %107 }
 0x106   :  { %v62_v17 = vmul.f32 0.6931472, %v108_v15  ;;  %v60_v18 = vpop.xlane.xlu1 %59 }
 0x107   :  { %109 = vlog2.f32 %v60_v18 }
 0x108   :  { %v65_v19 = vadd.f32 %v62_v17, %v48_v5 }
 0x10a   :  { %v77_v23 = vmul.f32 %v68_v16, %v65_v19 }
 0x10c   :  { %v79_v29 = vsub.f32 %v77_v23, %v74_v24 }
 0x10d   :  { %v110_v21 = vpop.eup %109 }
 0x10e   :  { %v64_v22 = vmul.f32 0.6931472, %v110_v21  ;;  %v76_v28 = vpop.xlane.xlu1 %75  ;;  %v85_v33 = vperm.slane %v79_v29, %v84_v26 }
 0x110   :  { %v66_v27 = vadd.f32 %v64_v22, %v50_v8 }
 0x112   :  { %v78_v30 = vmul.f32 %v70_v25, %v66_v27 }
 0x114   :  { %v80_v32 = vsub.f32 %v78_v30, %v76_v28 }
 0x116   :  { %v87_v34 = vperm.slane %v80_v32, %v86_v31 }
 0x118   :  { %v89_v35 = vsel %vm88_vm0, %v87_v34, %v85_v33 }
 0x119   :  { %92 = vst.msk [vmem:[%s193_s2] sm:$0x1] %vm91_vm1, %v89_v35 }
 0x11a   :  { %97 = vsyncpa [#allocation3], 1 }
 0x11b   :  { %98 = vsyncpa [#allocation5], 1 }

</bundles_post_ra>
